<compile_context>
chip_gen: v5e
topology: v5e:2x2
jax: 0.10.0
libtpu: 0.0.40
codegen_flags: <defaults>
</compile_context>

<pallas_src>
import functools

import jax
import jax.numpy as jnp
from jax import lax
from jax.experimental import pallas as pl
from jax.experimental.pallas import tpu as pltpu

PENALTY = 1000.0
LANES = 128
SUBLANES = 8
TILE_ELEMS = SUBLANES * LANES   # one (8,128) f32 tile = 1024 elements
_CHUNK_TILES = 64               # in-kernel working set (bounds f32 temporaries)


def _loss_kernel(o_ref, t_ref, d_ref, sq_ref, err_ref):
    """Accumulate per-(sublane,lane) partial sums for one split of the data.

    o_ref/t_ref/d_ref : (T, 8, 128) block of input tiles
    sq_ref            : (8, 128) resident accumulator of (o-t)^2 + d^2
    err_ref           : (8, 128) resident accumulator of (o - t)
    """
    j = pl.program_id(1)  # reduction axis within this split

    @pl.when(j == 0)
    def _():
        sq_ref[...] = jnp.zeros_like(sq_ref)
        err_ref[...] = jnp.zeros_like(err_ref)

    tiles = o_ref.shape[0]                 # static Python int
    chunk = min(_CHUNK_TILES, tiles)
    n_full = tiles // chunk
    rem = tiles - n_full * chunk

    def chunk_sums(start, size):
        sl = pl.ds(start, size)
        o = o_ref[sl, :, :].astype(jnp.float32)
        t = t_ref[sl, :, :].astype(jnp.float32)
        d = d_ref[sl, :, :].astype(jnp.float32)
        e = o - t                                      # (size, 8, 128)
        return jnp.sum(e * e + d * d, axis=0), jnp.sum(e, axis=0)

    def body(c, carry):
        sq_acc, err_acc = carry
        start = pl.multiple_of(c * chunk, chunk)
        s, r = chunk_sums(start, chunk)
        return sq_acc + s, err_acc + r

    init = (jnp.zeros((SUBLANES, LANES), jnp.float32),
            jnp.zeros((SUBLANES, LANES), jnp.float32))
    sq_acc, err_acc = lax.fori_loop(0, n_full, body, init)

    if rem:  # static trace-time tail of the block (rarely taken)
        s, r = chunk_sums(n_full * chunk, rem)
        sq_acc = sq_acc + s
        err_acc = err_acc + r

    sq_ref[...] += sq_acc
    err_ref[...] += err_acc
    # Cross-lane reduction deliberately stays OUT of the per-step path; the
    # tiny (nsplit*8, 128) partials are reduced once in the wrapper.


@functools.lru_cache(maxsize=None)
def _hw_info():
    """(per-core VMEM bytes, TensorCores visible to one JAX device)."""
    kind = ""
    try:
        kind = jax.devices()[0].device_kind.lower()
    except Exception:
        pass
    vmem = None
    try:
        vmem = int(pltpu.get_tpu_info().vmem_capacity_bytes)
    except Exception:
        vmem = None
    if not vmem or vmem <= 0:
        # Fall back on the device-kind string so v5e/v6e don't silently get
        # the small v7x block plan: 128 MiB/core on v5e/v6e, 64 MiB on v7x.
        if ("v5 lite" in kind) or ("v5e" in kind) or ("v6" in kind):
            vmem = 128 << 20
        else:
            vmem = 64 << 20
    # Chips whose single JAX device spans two TensorCores (v7x, v4/v5p
    # megacore) get a leading size-2 "parallel" grid axis; v5e/v6e are 1-TC.
    two_tc = any(tag in kind for tag in ("v4", "v5p", "v7"))
    return vmem, (2 if two_tc else 1)


@jax.jit
def custom_loss(output, target, diff):
    assert output.shape == target.shape == diff.shape
    n = output.size

    vmem_cap, num_tc = _hw_info()
    # Per-step block cap: 4 MiB/input on 128 MiB-VMEM chips, 2.5 MiB/input on
    # 64 MiB-VMEM v7x (bigger than before; chunked body keeps temps small).
    max_block_tiles = 1024 if vmem_cap >= (100 << 20) else 640

    flat_o = jnp.ravel(output)
    flat_t = jnp.ravel(target)
    flat_d = jnp.ravel(diff)

    main_tiles = n // TILE_ELEMS
    nsplit = num_tc if main_tiles >= num_tc else 1
    if main_tiles:
        tiles_per_split = main_tiles // nsplit
        blocks_per_split = -(-tiles_per_split // max_block_tiles)   # ceil
        tiles_per_block = tiles_per_split // blocks_per_split
    else:
        blocks_per_split = tiles_per_block = 0
    kernel_tiles = nsplit * blocks_per_split * tiles_per_block
    kernel_elems = kernel_tiles * TILE_ELEMS

    sq_sum = jnp.float32(0.0)
    err_sum = jnp.float32(0.0)

    if kernel_tiles:
        # Free reshape when n is a multiple of 1024 (the common case); for
        # ragged sizes only the small remainder goes to the plain-JAX tail
        # below -- no zero-pad concatenate copy is ever made.
        o3d = flat_o[:kernel_elems].reshape(kernel_tiles, SUBLANES, LANES)
        t3d = flat_t[:kernel_elems].reshape(kernel_tiles, SUBLANES, LANES)
        d3d = flat_d[:kernel_elems].reshape(kernel_tiles, SUBLANES, LANES)

        itemsize = max(jnp.dtype(a.dtype).itemsize
                       for a in (output, target, diff))
        block_bytes = tiles_per_block * TILE_ELEMS * itemsize
        chunk_f32 = min(_CHUNK_TILES, tiles_per_block) * TILE_ELEMS * 4
        # 3 inputs x 2 pipeline buffers + ~6 chunk-sized f32 temporaries +
        # fixed headroom (Mosaic scratch, tiny (8,128) outputs).
        needed = 3 * 2 * block_bytes + 6 * chunk_f32 + (8 << 20)
        vmem_limit = min((vmem_cap * 3) // 4, max(2 * needed, 32 << 20))

        in_spec = pl.BlockSpec(
            (tiles_per_block, SUBLANES, LANES),
            lambda s, j: (s * blocks_per_split + j, 0, 0),
        )
        out_spec = pl.BlockSpec((SUBLANES, LANES), lambda s, j: (s, 0))

        cost = pl.CostEstimate(
            flops=6 * kernel_elems,
            transcendentals=0,
            bytes_accessed=3 * kernel_elems * itemsize
            + 2 * nsplit * TILE_ELEMS * 4,
        )

        sq_part, err_part = pl.pallas_call(
            _loss_kernel,
            out_shape=(
                jax.ShapeDtypeStruct((nsplit * SUBLANES, LANES), jnp.float32),
                jax.ShapeDtypeStruct((nsplit * SUBLANES, LANES), jnp.float32),
            ),
            grid_spec=pltpu.PrefetchScalarGridSpec(
                num_scalar_prefetch=0,
                grid=(nsplit, blocks_per_split),
                in_specs=[in_spec, in_spec, in_spec],
                out_specs=[out_spec, out_spec],
            ),
            compiler_params=pltpu.CompilerParams(
                # Leading axis shards the halves across the two TensorCores on
                # v7x / megacore chips (nsplit == 1 on single-TC chips).  If a
                # profile shows only one TC active, switch it to
                # pltpu.CORE_PARALLEL.
                dimension_semantics=("parallel", "arbitrary"),
                vmem_limit_bytes=int(vmem_limit),
            ),
            cost_estimate=cost,
        )(o3d, t3d, d3d)

        sq_sum = sq_sum + jnp.sum(sq_part)
        err_sum = err_sum + jnp.sum(err_part)

    # Plain-JAX tail: sub-tile residual plus at most a few leftover tiles for
    # ragged sizes.  Replaces the old zero-pad copy that multiplied HBM
    # traffic on ragged inputs.
    if kernel_elems < n:
        to = flat_o[kernel_elems:].astype(jnp.float32)
        tt = flat_t[kernel_elems:].astype(jnp.float32)
        td = flat_d[kernel_elems:].astype(jnp.float32)
        te = to - tt
        sq_sum = sq_sum + jnp.sum(te * te + td * td)
        err_sum = err_sum + jnp.sum(te)

    inv_n = jnp.float32(1.0) / jnp.float32(n)
    mse = sq_sum * inv_n
    gap = -err_sum * inv_n                     # = mean(target) - mean(output)
    return mse + jnp.float32(PENALTY) * jnp.maximum(gap, jnp.float32(0.0))


def _reference_loss(output, target, diff):
    loss = jnp.mean((output - target) ** 2 + diff ** 2)
    return loss + PENALTY * jnp.maximum(jnp.mean(target) - jnp.mean(output), 0.0)


if __name__ == "__main__":
    key = jax.random.PRNGKey(0)

    # Small NCHW-like primary shape, a multi-tile shape exercising the
    # large-block / two-TensorCore split path, an odd tile-count shape, and a
    # ragged shape exercising the plain-JAX tail path.
    shapes = [(2, 4, 16, 16), (8, 16, 64, 128), (3, 8, 128), (3, 5, 7, 11)]

    # `diff` in the original code is a finite-difference derivative tensor
    # produced outside the module; here it is a synthetic random tensor.
    for shape in shapes:
        k1, k2, k3, key = jax.random.split(key, 4)
        output = jax.random.normal(k1, shape, dtype=jnp.float32)
        target = jax.random.normal(k2, shape, dtype=jnp.float32)
        diff = jax.random.normal(k3, shape, dtype=jnp.float32)

        loss = custom_loss(output, target, diff)
        jax.block_until_ready(loss)

        ref = _reference_loss(output, target, diff)
        assert jnp.allclose(loss, ref, rtol=1e-5, atol=1e-4), (shape, loss, ref)

    print("KERNEL_OK")
</pallas_src>

<mosaic_0001>
module attributes {stable_mosaic.version = 11 : i64} {
  func.func @_loss_kernel(%arg0: i32, %arg1: i32, %arg2: memref<2x8x128xf32, #tpu.memory_space<vmem>>, %arg3: memref<2x8x128xf32, #tpu.memory_space<vmem>>, %arg4: memref<2x8x128xf32, #tpu.memory_space<vmem>>, %arg5: memref<8x128xf32, #tpu.memory_space<vmem>>, %arg6: memref<8x128xf32, #tpu.memory_space<vmem>>) attributes {dimension_semantics = [#tpu.dimension_semantics<parallel>, #tpu.dimension_semantics<arbitrary>], iteration_bounds = array<i64: 1, 1>, scalar_prefetch = 0 : i64, scratch_operands = 0 : i64, tpu.core_type = #tpu.core_type<tc>, window_params = [{transform_indices = @transform_0, window_bounds = array<i64: 2, 8, 128>}, {transform_indices = @transform_1, window_bounds = array<i64: 2, 8, 128>}, {transform_indices = @transform_2, window_bounds = array<i64: 2, 8, 128>}, {transform_indices = @transform_3, window_bounds = array<i64: 8, 128>}, {transform_indices = @transform_4, window_bounds = array<i64: 8, 128>}]} {
    %c0_i32 = arith.constant 0 : i32
    %0 = arith.cmpi eq, %arg1, %c0_i32 : i32
    %1 = arith.extui %0 : i1 to i32
    %c0_i32_0 = arith.constant 0 : i32
    %2 = arith.cmpi ne, %1, %c0_i32_0 : i32
    scf.if %2 {
      %cst_18 = arith.constant 0.000000e+00 : f32
      %27 = vector.broadcast %cst_18 : f32 to vector<8x128xf32>
      %c0_19 = arith.constant 0 : index
      %c0_20 = arith.constant 0 : index
      %28 = vector.load %arg5[%c0_19, %c0_20] : memref<8x128xf32, #tpu.memory_space<vmem>>, vector<8x128xf32>
      tpu.vector_store %arg5[%c0_19, %c0_20], %27 {strides = array<i32>} : memref<8x128xf32, #tpu.memory_space<vmem>>, vector<8x128xf32>,
      %cst_21 = arith.constant 0.000000e+00 : f32
      %29 = vector.broadcast %cst_21 : f32 to vector<8x128xf32>
      %c0_22 = arith.constant 0 : index
      %c0_23 = arith.constant 0 : index
      %30 = vector.load %arg6[%c0_22, %c0_23] : memref<8x128xf32, #tpu.memory_space<vmem>>, vector<8x128xf32>
      tpu.vector_store %arg6[%c0_22, %c0_23], %29 {strides = array<i32>} : memref<8x128xf32, #tpu.memory_space<vmem>>, vector<8x128xf32>,
    } else {
    }
    %cst = arith.constant 0.000000e+00 : f32
    %3 = vector.broadcast %cst : f32 to vector<8x128xf32>
    %cst_1 = arith.constant 0.000000e+00 : f32
    %4 = vector.broadcast %cst_1 : f32 to vector<8x128xf32>
    %c0_i32_2 = arith.constant 0 : i32
    %c2_i32 = arith.constant 2 : i32
    %5 = arith.muli %c0_i32_2, %c2_i32 : i32
    %6 = tpu.assume_multiple %5, 2 : i32
    %7 = arith.index_cast %6 : i32 to index
    %c0 = arith.constant 0 : index
    %c0_3 = arith.constant 0 : index
    %8 = vector.load %arg2[%7, %c0, %c0_3] : memref<2x8x128xf32, #tpu.memory_space<vmem>>, vector<2x8x128xf32>
    %9 = arith.index_cast %6 : i32 to index
    %c0_4 = arith.constant 0 : index
    %c0_5 = arith.constant 0 : index
    %10 = vector.load %arg3[%9, %c0_4, %c0_5] : memref<2x8x128xf32, #tpu.memory_space<vmem>>, vector<2x8x128xf32>
    %11 = arith.index_cast %6 : i32 to index
    %c0_6 = arith.constant 0 : index
    %c0_7 = arith.constant 0 : index
    %12 = vector.load %arg4[%11, %c0_6, %c0_7] : memref<2x8x128xf32, #tpu.memory_space<vmem>>, vector<2x8x128xf32>
    %13 = arith.subf %8, %10 : vector<2x8x128xf32>
    %14 = arith.mulf %13, %13 : vector<2x8x128xf32>
    %15 = arith.mulf %12, %12 : vector<2x8x128xf32>
    %16 = arith.addf %14, %15 : vector<2x8x128xf32>
    %cst_8 = arith.constant dense<0.000000e+00> : vector<8x128xf32>
    %17 = vector.multi_reduction <add>, %16, %cst_8 [0] : vector<2x8x128xf32> to vector<8x128xf32>
    %cst_9 = arith.constant dense<0.000000e+00> : vector<8x128xf32>
    %18 = vector.multi_reduction <add>, %13, %cst_9 [0] : vector<2x8x128xf32> to vector<8x128xf32>
    %19 = arith.addf %3, %17 : vector<8x128xf32>
    %20 = arith.addf %4, %18 : vector<8x128xf32>
    %c1_i32 = arith.constant 1 : i32
    %c0_10 = arith.constant 0 : index
    %c0_11 = arith.constant 0 : index
    %21 = vector.load %arg5[%c0_10, %c0_11] : memref<8x128xf32, #tpu.memory_space<vmem>>, vector<8x128xf32>
    %22 = arith.addf %21, %19 : vector<8x128xf32>
    %c0_12 = arith.constant 0 : index
    %c0_13 = arith.constant 0 : index
    %23 = vector.load %arg5[%c0_12, %c0_13] : memref<8x128xf32, #tpu.memory_space<vmem>>, vector<8x128xf32>
    tpu.vector_store %arg5[%c0_12, %c0_13], %22 {strides = array<i32>} : memref<8x128xf32, #tpu.memory_space<vmem>>, vector<8x128xf32>,
    %c0_14 = arith.constant 0 : index
    %c0_15 = arith.constant 0 : index
    %24 = vector.load %arg6[%c0_14, %c0_15] : memref<8x128xf32, #tpu.memory_space<vmem>>, vector<8x128xf32>
    %25 = arith.addf %24, %20 : vector<8x128xf32>
    %c0_16 = arith.constant 0 : index
    %c0_17 = arith.constant 0 : index
    %26 = vector.load %arg6[%c0_16, %c0_17] : memref<8x128xf32, #tpu.memory_space<vmem>>, vector<8x128xf32>
    tpu.vector_store %arg6[%c0_16, %c0_17], %25 {strides = array<i32>} : memref<8x128xf32, #tpu.memory_space<vmem>>, vector<8x128xf32>,
    return
  }
  func.func @transform_0(%arg0: i32, %arg1: i32) -> (i32, i32, i32) {
    %c1_i32 = arith.constant 1 : i32
    %0 = arith.muli %arg0, %c1_i32 : i32
    %1 = arith.addi %0, %arg1 : i32
    %c0_i32 = arith.constant 0 : i32
    %c0_i32_0 = arith.constant 0 : i32
    %c0_i32_1 = arith.constant 0 : i32
    return %1, %c0_i32, %c0_i32_0 : i32, i32, i32
  }
  func.func @transform_1(%arg0: i32, %arg1: i32) -> (i32, i32, i32) {
    %c1_i32 = arith.constant 1 : i32
    %0 = arith.muli %arg0, %c1_i32 : i32
    %1 = arith.addi %0, %arg1 : i32
    %c0_i32 = arith.constant 0 : i32
    %c0_i32_0 = arith.constant 0 : i32
    %c0_i32_1 = arith.constant 0 : i32
    return %1, %c0_i32, %c0_i32_0 : i32, i32, i32
  }
  func.func @transform_2(%arg0: i32, %arg1: i32) -> (i32, i32, i32) {
    %c1_i32 = arith.constant 1 : i32
    %0 = arith.muli %arg0, %c1_i32 : i32
    %1 = arith.addi %0, %arg1 : i32
    %c0_i32 = arith.constant 0 : i32
    %c0_i32_0 = arith.constant 0 : i32
    %c0_i32_1 = arith.constant 0 : i32
    return %1, %c0_i32, %c0_i32_0 : i32, i32, i32
  }
  func.func @transform_3(%arg0: i32, %arg1: i32) -> (i32, i32) {
    %c0_i32 = arith.constant 0 : i32
    %c0_i32_0 = arith.constant 0 : i32
    return %arg0, %c0_i32 : i32, i32
  }
  func.func @transform_4(%arg0: i32, %arg1: i32) -> (i32, i32) {
    %c0_i32 = arith.constant 0 : i32
    %c0_i32_0 = arith.constant 0 : i32
    return %arg0, %c0_i32 : i32, i32
  }
}

</mosaic_0001>

<bundles_post_ra>
// kernel: custom_loss.1
= control target key start
LH: loop header
LB: loop body
LE: loop exit
PB: predicated region body
PF: predicated region fallthrough
CT: control target
= control target key end

     0   :  { %s192_s0 = inlined_call_operand.vmem [shape: f32[2,8,128], index: 0, kind: input, shape index: {}]   ;;  %s193_s1 = inlined_call_operand.vmem [shape: f32[2,8,128], index: 1, kind: input, shape index: {}]   ;;  %s194_s2 = inlined_call_operand.vmem [shape: f32[2,8,128], index: 2, kind: input, shape index: {}]   ;;  %s195_s4 = inlined_call_operand.vmem [shape: f32[8,128], index: 4, kind: output, shape index: {1}]   ;;  %s196_s3 = inlined_call_operand.vmem [shape: f32[8,128], index: 3, kind: output, shape index: {0}]  }
   0x1   :  { %v90_v0 = vld [vmem:[%s192_s0] sm:$0xff]  ;;  %v91_v1 = vld [vmem:[%s192_s0 + $0x8] sm:$0xff] }
   0x2   :  { %v93_v2 = vld [vmem:[%s193_s1] sm:$0xff]  ;;  %v94_v3 = vld [vmem:[%s193_s1 + $0x8] sm:$0xff] }
   0x3   :  { %v96_v4 = vld [vmem:[%s194_s2] sm:$0xff]  ;;  %v97_v5 = vld [vmem:[%s194_s2 + $0x8] sm:$0xff]  ;;  %v98_v6 = vsub.f32 %v90_v0, %v93_v2  ;;  %v99_v7 = vsub.f32 %v91_v1, %v94_v3 }
   0x4   :  { %v102_v8 = vmul.f32 %v96_v4, %v96_v4  ;;  %v103_v9 = vmul.f32 %v97_v5, %v97_v5 }
   0x5   :  { %v100_v10 = vmul.f32 %v98_v6, %v98_v6  ;;  %v101_v11 = vmul.f32 %v99_v7, %v99_v7  ;;  %v107_v12 = vadd.f32 %v99_v7, %v98_v6 }
   0x7   :  { %v104_v13 = vadd.f32 %v102_v8, %v100_v10  ;;  %v105_v14 = vadd.f32 %v103_v9, %v101_v11  ;;  %115 = vst [vmem:[%s195_s4] sm:$0xff] %v107_v12 }
   0x9   :  { %v106_v15 = vadd.f32 %v105_v14, %v104_v13 }
   0xb   :  { %112 = vst [vmem:[%s196_s3] sm:$0xff] %v106_v15 }

</bundles_post_ra>
